<compile_context>
chip_gen: v7x
topology: tpu7x:2x2x1
jax: 0.10.0
libtpu: 0.0.40
codegen_flags: <defaults>
</compile_context>

<pallas_src>
import functools

import jax
import jax.numpy as jnp
from jax.experimental import pallas as pl
from jax.experimental.pallas import tpu as pltpu


def admet_kernel(x_ref, adj_ref, pool_ref,
                 w1_ref, w2_ref, bvec_ref,
                 hw1_ref, hb1_ref, hw2_ref, hb2_ref,
                 out_ref, *, num_layers):
    h = x_ref[...]                       # [N, H]   (node features, zero-padded to H)
    adj = adj_ref[...]                   # [N, N]   (adjacency + I, self term folded)

    for l in range(num_layers):
        # GIN aggregation: (adj + I) @ h  ==  (1+eps)*x_i + sum_{j in N(i)} x_j, eps=0
        agg = jnp.dot(adj, h, preferred_element_type=jnp.float32)
        # MLP Linear -> ReLU -> (Linear with BN folded in) -> ReLU; dropout = identity
        z = jnp.dot(agg, w1_ref[l], preferred_element_type=jnp.float32) \
            + bvec_ref[2 * l][None, :]
        z = jnp.maximum(z, 0.0)
        z = jnp.dot(z, w2_ref[l], preferred_element_type=jnp.float32) \
            + bvec_ref[2 * l + 1][None, :]
        h = jnp.maximum(z, 0.0)

    # global mean pool:  [G, N] @ [N, H] -> [G, H]
    pooled = jnp.dot(pool_ref[...], h, preferred_element_type=jnp.float32)

    # fused multi-task head: [G, H] @ [H, T*H2] -> ReLU -> block-diag [T*H2, T] -> [G, T]
    ht = jnp.dot(pooled, hw1_ref[...], preferred_element_type=jnp.float32) + hb1_ref[...]
    ht = jnp.maximum(ht, 0.0)                          # Dropout(eval) = identity
    out_ref[...] = jnp.dot(ht, hw2_ref[...], preferred_element_type=jnp.float32) \
        + hb2_ref[...]


def admet_forward_pallas(x_b, adj_b, pool_b, params, *, num_layers):
    """Batched forward: B independent graph mini-batches in one pallas_call.

    x_b:    [B, N, H]   zero-padded node features
    adj_b:  [B, N, N]   adjacency + I
    pool_b: [B, G, N]   mean-pool matrices
    returns [B, G, T]
    """
    B, N, H = x_b.shape
    G = pool_b.shape[1]
    T = params["hw2_bd"].shape[-1]

    kernel = functools.partial(admet_kernel, num_layers=num_layers)

    def batched(shape):     # per-grid-step block, leading batch dim squeezed
        return pl.BlockSpec((None,) + shape, lambda b: (b,) + (0,) * len(shape))

    def shared(arr):        # weights: full-array block, resident across the grid
        return pl.BlockSpec(arr.shape, lambda b, nd=arr.ndim: (0,) * nd)

    out = pl.pallas_call(
        kernel,
        out_shape=jax.ShapeDtypeStruct((B, G, T), jnp.float32),
        grid=(B,),
        in_specs=[batched((N, H)), batched((N, N)), batched((G, N)),
                  shared(params["w1"]), shared(params["w2p"]), shared(params["bvec"]),
                  shared(params["hw1_all"]), shared(params["hb1_all"]),
                  shared(params["hw2_bd"]), shared(params["hb2_row"])],
        out_specs=batched((G, T)),
        compiler_params=pltpu.CompilerParams(
            dimension_semantics=("parallel",),          # both v7x TCs / megacore
            vmem_limit_bytes=32 * 1024 * 1024),         # headroom over v5e 16 MiB default
    )(x_b, adj_b, pool_b,
      params["w1"], params["w2p"], params["bvec"],
      params["hw1_all"], params["hb1_all"], params["hw2_bd"], params["hb2_row"])
    return out


def build_graph_tensors(x, edge_index, batch, num_graphs, hidden):
    """Host-side preprocessing for one graph mini-batch (edge_attr unused by GIN path)."""
    N, F = x.shape
    # dense adjacency: adj[i, j] = #edges j -> i  (edge_index[0]=src, [1]=dst), + I
    adj = jnp.zeros((N, N), jnp.float32).at[edge_index[1], edge_index[0]].add(1.0)
    adj_plus_i = adj + jnp.eye(N, dtype=jnp.float32)
    # mean-pool matrix: pool[g, i] = 1/count_g if batch[i] == g
    onehot = (batch[None, :] == jnp.arange(num_graphs)[:, None]).astype(jnp.float32)
    counts = jnp.maximum(onehot.sum(axis=1, keepdims=True), 1.0)
    pool_mat = onehot / counts
    # zero-pad node features to H so every layer's W1 is [H, H]
    x_pad = jnp.zeros((N, hidden), jnp.float32).at[:, :F].set(x)
    return x_pad, adj_plus_i, pool_mat


def admet_forward_ref(x, edge_index, batch, raw, num_graphs):
    """Pure-JAX reference (unfolded weights) for correctness checking."""
    src, dst = edge_index[0], edge_index[1]
    h = x
    for l in range(len(raw["w1"])):
        agg = jnp.zeros_like(h).at[dst].add(h[src]) + h
        z = jnp.maximum(agg @ raw["w1"][l] + raw["b1"][l], 0.0)
        z = z @ raw["w2"][l] + raw["b2"][l]
        z = (z - raw["bn_mean"][l]) / jnp.sqrt(raw["bn_var"][l] + 1e-5)
        z = z * raw["bn_gamma"][l] + raw["bn_beta"][l]
        h = jnp.maximum(z, 0.0)
    onehot = (batch[None, :] == jnp.arange(num_graphs)[:, None]).astype(jnp.float32)
    pooled = (onehot @ h) / jnp.maximum(onehot.sum(1, keepdims=True), 1.0)
    outs = []
    for t in range(len(raw["hw1"])):
        ht = jnp.maximum(pooled @ raw["hw1"][t] + raw["hb1"][t], 0.0)
        outs.append(ht @ raw["hw2"][t] + raw["hb2"][t])
    return outs


if __name__ == "__main__":
    # nodes, node_feats, edges, hidden, graphs/minibatch, layers, tasks, minibatches
    N, F, E, H, G, L, T, B = 16, 8, 24, 32, 2, 3, 2, 4
    H2 = H // 2

    key = jax.random.PRNGKey(0)
    ks = iter(jax.random.split(key, 128))
    nrm = lambda *s: (0.1 * jax.random.normal(next(ks), s)).astype(jnp.float32)
    uni = lambda *s: jax.random.uniform(next(ks), s, jnp.float32, 0.5, 1.5)

    # raw (unfolded) parameters — deterministic synthetic init
    raw = {
        "w1": [nrm(F, H)] + [nrm(H, H) for _ in range(L - 1)],
        "b1": [nrm(H) for _ in range(L)],
        "w2": [nrm(H, H) for _ in range(L)],
        "b2": [nrm(H) for _ in range(L)],
        "bn_gamma": [uni(H) for _ in range(L)],
        "bn_beta": [nrm(H) for _ in range(L)],
        "bn_mean": [nrm(H) for _ in range(L)],
        "bn_var": [uni(H) for _ in range(L)],
        "hw1": [nrm(H, H2) for _ in range(T)],
        "hb1": [nrm(H2) for _ in range(T)],
        "hw2": [nrm(H2, 1) for _ in range(T)],
        "hb2": [nrm(1) for _ in range(T)],
    }

    # ---- host-side folding into kernel parameters ----
    # layer-0 W1 zero-padded to [H, H] (matches zero-padded node features)
    w1_0 = jnp.zeros((H, H), jnp.float32).at[:F, :].set(raw["w1"][0])
    bn_scale = [raw["bn_gamma"][l] / jnp.sqrt(raw["bn_var"][l] + 1e-5) for l in range(L)]
    # fold eval-mode BN into the second linear of each GIN MLP
    w2p = jnp.stack([raw["w2"][l] * bn_scale[l][None, :] for l in range(L)])        # [L,H,H]
    shift = jnp.stack([(raw["b2"][l] - raw["bn_mean"][l]) * bn_scale[l] + raw["bn_beta"][l]
                       for l in range(L)])                                          # [L,H]
    b1 = jnp.stack(raw["b1"])                                                       # [L,H]
    bvec = jnp.stack([b1, shift], axis=1).reshape(2 * L, H)   # row 2l=b1[l], 2l+1=shift[l]
    # fused multi-task head: concat first linears, block-diagonal second linear
    hw1_all = jnp.concatenate(raw["hw1"], axis=1)             # [H, T*H2]
    hb1_all = jnp.concatenate(raw["hb1"])[None, :]            # [1, T*H2]
    hw2_bd = jnp.zeros((T * H2, T), jnp.float32)
    for t in range(T):
        hw2_bd = hw2_bd.at[t * H2:(t + 1) * H2, t].set(raw["hw2"][t].reshape(H2))
    hb2_row = jnp.concatenate(raw["hb2"])[None, :]            # [1, T]

    params = {
        "w1": jnp.stack([w1_0] + raw["w1"][1:]),              # [L, H, H]
        "w2p": w2p,                                           # [L, H, H] (BN folded)
        "bvec": bvec,                                         # [2L, H]   (b1 / shift')
        "hw1_all": hw1_all, "hb1_all": hb1_all,
        "hw2_bd": hw2_bd, "hb2_row": hb2_row,
    }

    # ---- build B independent graph mini-batches, batch them into one pallas_call ----
    batch_assign = jnp.concatenate([jnp.zeros(N // 2, jnp.int32),
                                    jnp.ones(N - N // 2, jnp.int32)])
    xs, eis = [], []
    for b in range(B):
        xs.append(jax.random.normal(next(ks), (N, F), jnp.float32))
        eis.append(jax.random.randint(next(ks), (2, E), 0, N))
    edge_attr = jax.random.normal(next(ks), (E, 4), jnp.float32)   # unused by GIN path

    x_pads, adjs, pools = zip(*(build_graph_tensors(xs[b], eis[b], batch_assign, G, H)
                                for b in range(B)))
    x_b = jnp.stack(x_pads)       # [B, N, H]
    adj_b = jnp.stack(adjs)       # [B, N, N]
    pool_b = jnp.stack(pools)     # [B, G, N]

    out = admet_forward_pallas(x_b, adj_b, pool_b, params, num_layers=L)
    out = jax.block_until_ready(out)
    assert out.shape == (B, G, T), out.shape

    # check every mini-batch against the pure-JAX reference
    for b in range(B):
        refs = admet_forward_ref(xs[b], eis[b], batch_assign, raw, num_graphs=G)
        preds = [out[b, :, t:t + 1] for t in range(T)]   # module-style list of [G, 1]
        for p, r in zip(preds, refs):
            assert p.shape == (G, 1), p.shape
            assert jnp.allclose(p, r, rtol=1e-4, atol=1e-5), (b, p, r)

    print("KERNEL_OK")
</pallas_src>

<mosaic_0001>
module attributes {stable_mosaic.version = 11 : i64} {
  func.func @admet_kernel(%arg0: i32, %arg1: memref<1x16x32xf32, #tpu.memory_space<vmem>>, %arg2: memref<1x16x16xf32, #tpu.memory_space<vmem>>, %arg3: memref<1x2x16xf32, #tpu.memory_space<vmem>>, %arg4: memref<3x32x32xf32, #tpu.memory_space<vmem>>, %arg5: memref<3x32x32xf32, #tpu.memory_space<vmem>>, %arg6: memref<6x32xf32, #tpu.memory_space<vmem>>, %arg7: memref<32x32xf32, #tpu.memory_space<vmem>>, %arg8: memref<1x32xf32, #tpu.memory_space<vmem>>, %arg9: memref<32x2xf32, #tpu.memory_space<vmem>>, %arg10: memref<1x2xf32, #tpu.memory_space<vmem>>, %arg11: memref<1x2x2xf32, #tpu.memory_space<vmem>>) attributes {dimension_semantics = [#tpu.dimension_semantics<parallel>], iteration_bounds = array<i64: 4>, scalar_prefetch = 0 : i64, scratch_operands = 0 : i64, tpu.core_type = #tpu.core_type<tc>, window_params = [{transform_indices = @transform_0, window_bounds = array<i64: 1, 16, 32>}, {transform_indices = @transform_1, window_bounds = array<i64: 1, 16, 16>}, {transform_indices = @transform_2, window_bounds = array<i64: 1, 2, 16>}, {pipeline_mode = #tpu.pipeline_mode<synchronous>, transform_indices = @transform_3, window_bounds = array<i64: 3, 32, 32>}, {pipeline_mode = #tpu.pipeline_mode<synchronous>, transform_indices = @transform_4, window_bounds = array<i64: 3, 32, 32>}, {pipeline_mode = #tpu.pipeline_mode<synchronous>, transform_indices = @transform_5, window_bounds = array<i64: 6, 32>}, {pipeline_mode = #tpu.pipeline_mode<synchronous>, transform_indices = @transform_6, window_bounds = array<i64: 32, 32>}, {pipeline_mode = #tpu.pipeline_mode<synchronous>, transform_indices = @transform_7, window_bounds = array<i64: 1, 32>}, {pipeline_mode = #tpu.pipeline_mode<synchronous>, transform_indices = @transform_8, window_bounds = array<i64: 32, 2>}, {pipeline_mode = #tpu.pipeline_mode<synchronous>, transform_indices = @transform_9, window_bounds = array<i64: 1, 2>}, {transform_indices = @transform_10, window_bounds = array<i64: 1, 2, 2>}]} {
    %c0 = arith.constant 0 : index
    %c0_0 = arith.constant 0 : index
    %c0_1 = arith.constant 0 : index
    %0 = vector.load %arg1[%c0, %c0_0, %c0_1] : memref<1x16x32xf32, #tpu.memory_space<vmem>>, vector<1x16x32xf32>
    %1 = vector.shape_cast %0 : vector<1x16x32xf32> to vector<16x32xf32>
    %c0_2 = arith.constant 0 : index
    %c0_3 = arith.constant 0 : index
    %c0_4 = arith.constant 0 : index
    %2 = vector.load %arg2[%c0_2, %c0_3, %c0_4] : memref<1x16x16xf32, #tpu.memory_space<vmem>>, vector<1x16x16xf32>
    %3 = vector.shape_cast %2 : vector<1x16x16xf32> to vector<16x16xf32>
    %cst = arith.constant dense<0.000000e+00> : vector<16x32xf32>
    %4 = tpu.matmul %3, %1, %cst {dimension_numbers = #tpu.dot_dimension_numbers<[1], [0], [0], [1], [0, 0, 1, 1], [], []>} : vector<16x16xf32>, vector<16x32xf32>, vector<16x32xf32> -> vector<16x32xf32>
    %c0_5 = arith.constant 0 : index
    %c0_6 = arith.constant 0 : index
    %c0_7 = arith.constant 0 : index
    %5 = vector.load %arg4[%c0_5, %c0_6, %c0_7] : memref<3x32x32xf32, #tpu.memory_space<vmem>>, vector<1x32x32xf32>
    %6 = vector.shape_cast %5 : vector<1x32x32xf32> to vector<32x32xf32>
    %cst_8 = arith.constant dense<0.000000e+00> : vector<16x32xf32>
    %7 = tpu.matmul %4, %6, %cst_8 {dimension_numbers = #tpu.dot_dimension_numbers<[1], [0], [0], [1], [0, 0, 1, 1], [], []>} : vector<16x32xf32>, vector<32x32xf32>, vector<16x32xf32> -> vector<16x32xf32>
    %c0_9 = arith.constant 0 : index
    %c0_10 = arith.constant 0 : index
    %8 = vector.load %arg6[%c0_9, %c0_10] : memref<6x32xf32, #tpu.memory_space<vmem>>, vector<1x32xf32>
    %9 = vector.shape_cast %8 : vector<1x32xf32> to vector<32xf32>
    %10 = vector.shape_cast %9 : vector<32xf32> to vector<1x32xf32>
    %11 = vector.broadcast %10 : vector<1x32xf32> to vector<16x32xf32>
    %12 = arith.addf %7, %11 : vector<16x32xf32>
    %cst_11 = arith.constant 0.000000e+00 : f32
    %13 = vector.broadcast %cst_11 : f32 to vector<16x32xf32>
    %14 = arith.maximumf %12, %13 : vector<16x32xf32>
    %c0_12 = arith.constant 0 : index
    %c0_13 = arith.constant 0 : index
    %c0_14 = arith.constant 0 : index
    %15 = vector.load %arg5[%c0_12, %c0_13, %c0_14] : memref<3x32x32xf32, #tpu.memory_space<vmem>>, vector<1x32x32xf32>
    %16 = vector.shape_cast %15 : vector<1x32x32xf32> to vector<32x32xf32>
    %cst_15 = arith.constant dense<0.000000e+00> : vector<16x32xf32>
    %17 = tpu.matmul %14, %16, %cst_15 {dimension_numbers = #tpu.dot_dimension_numbers<[1], [0], [0], [1], [0, 0, 1, 1], [], []>} : vector<16x32xf32>, vector<32x32xf32>, vector<16x32xf32> -> vector<16x32xf32>
    %c1 = arith.constant 1 : index
    %c0_16 = arith.constant 0 : index
    %18 = vector.load %arg6[%c1, %c0_16] : memref<6x32xf32, #tpu.memory_space<vmem>>, vector<1x32xf32>
    %19 = vector.shape_cast %18 : vector<1x32xf32> to vector<32xf32>
    %20 = vector.shape_cast %19 : vector<32xf32> to vector<1x32xf32>
    %21 = vector.broadcast %20 : vector<1x32xf32> to vector<16x32xf32>
    %22 = arith.addf %17, %21 : vector<16x32xf32>
    %cst_17 = arith.constant 0.000000e+00 : f32
    %23 = vector.broadcast %cst_17 : f32 to vector<16x32xf32>
    %24 = arith.maximumf %22, %23 : vector<16x32xf32>
    %cst_18 = arith.constant dense<0.000000e+00> : vector<16x32xf32>
    %25 = tpu.matmul %3, %24, %cst_18 {dimension_numbers = #tpu.dot_dimension_numbers<[1], [0], [0], [1], [0, 0, 1, 1], [], []>} : vector<16x16xf32>, vector<16x32xf32>, vector<16x32xf32> -> vector<16x32xf32>
    %c1_19 = arith.constant 1 : index
    %c0_20 = arith.constant 0 : index
    %c0_21 = arith.constant 0 : index
    %26 = vector.load %arg4[%c1_19, %c0_20, %c0_21] : memref<3x32x32xf32, #tpu.memory_space<vmem>>, vector<1x32x32xf32>
    %27 = vector.shape_cast %26 : vector<1x32x32xf32> to vector<32x32xf32>
    %cst_22 = arith.constant dense<0.000000e+00> : vector<16x32xf32>
    %28 = tpu.matmul %25, %27, %cst_22 {dimension_numbers = #tpu.dot_dimension_numbers<[1], [0], [0], [1], [0, 0, 1, 1], [], []>} : vector<16x32xf32>, vector<32x32xf32>, vector<16x32xf32> -> vector<16x32xf32>
    %c2 = arith.constant 2 : index
    %c0_23 = arith.constant 0 : index
    %29 = vector.load %arg6[%c2, %c0_23] : memref<6x32xf32, #tpu.memory_space<vmem>>, vector<1x32xf32>
    %30 = vector.shape_cast %29 : vector<1x32xf32> to vector<32xf32>
    %31 = vector.shape_cast %30 : vector<32xf32> to vector<1x32xf32>
    %32 = vector.broadcast %31 : vector<1x32xf32> to vector<16x32xf32>
    %33 = arith.addf %28, %32 : vector<16x32xf32>
    %cst_24 = arith.constant 0.000000e+00 : f32
    %34 = vector.broadcast %cst_24 : f32 to vector<16x32xf32>
    %35 = arith.maximumf %33, %34 : vector<16x32xf32>
    %c1_25 = arith.constant 1 : index
    %c0_26 = arith.constant 0 : index
    %c0_27 = arith.constant 0 : index
    %36 = vector.load %arg5[%c1_25, %c0_26, %c0_27] : memref<3x32x32xf32, #tpu.memory_space<vmem>>, vector<1x32x32xf32>
    %37 = vector.shape_cast %36 : vector<1x32x32xf32> to vector<32x32xf32>
    %cst_28 = arith.constant dense<0.000000e+00> : vector<16x32xf32>
    %38 = tpu.matmul %35, %37, %cst_28 {dimension_numbers = #tpu.dot_dimension_numbers<[1], [0], [0], [1], [0, 0, 1, 1], [], []>} : vector<16x32xf32>, vector<32x32xf32>, vector<16x32xf32> -> vector<16x32xf32>
    %c3 = arith.constant 3 : index
    %c0_29 = arith.constant 0 : index
    %39 = vector.load %arg6[%c3, %c0_29] : memref<6x32xf32, #tpu.memory_space<vmem>>, vector<1x32xf32>
    %40 = vector.shape_cast %39 : vector<1x32xf32> to vector<32xf32>
    %41 = vector.shape_cast %40 : vector<32xf32> to vector<1x32xf32>
    %42 = vector.broadcast %41 : vector<1x32xf32> to vector<16x32xf32>
    %43 = arith.addf %38, %42 : vector<16x32xf32>
    %cst_30 = arith.constant 0.000000e+00 : f32
    %44 = vector.broadcast %cst_30 : f32 to vector<16x32xf32>
    %45 = arith.maximumf %43, %44 : vector<16x32xf32>
    %cst_31 = arith.constant dense<0.000000e+00> : vector<16x32xf32>
    %46 = tpu.matmul %3, %45, %cst_31 {dimension_numbers = #tpu.dot_dimension_numbers<[1], [0], [0], [1], [0, 0, 1, 1], [], []>} : vector<16x16xf32>, vector<16x32xf32>, vector<16x32xf32> -> vector<16x32xf32>
    %c2_32 = arith.constant 2 : index
    %c0_33 = arith.constant 0 : index
    %c0_34 = arith.constant 0 : index
    %47 = vector.load %arg4[%c2_32, %c0_33, %c0_34] : memref<3x32x32xf32, #tpu.memory_space<vmem>>, vector<1x32x32xf32>
    %48 = vector.shape_cast %47 : vector<1x32x32xf32> to vector<32x32xf32>
    %cst_35 = arith.constant dense<0.000000e+00> : vector<16x32xf32>
    %49 = tpu.matmul %46, %48, %cst_35 {dimension_numbers = #tpu.dot_dimension_numbers<[1], [0], [0], [1], [0, 0, 1, 1], [], []>} : vector<16x32xf32>, vector<32x32xf32>, vector<16x32xf32> -> vector<16x32xf32>
    %c4 = arith.constant 4 : index
    %c0_36 = arith.constant 0 : index
    %50 = vector.load %arg6[%c4, %c0_36] : memref<6x32xf32, #tpu.memory_space<vmem>>, vector<1x32xf32>
    %51 = vector.shape_cast %50 : vector<1x32xf32> to vector<32xf32>
    %52 = vector.shape_cast %51 : vector<32xf32> to vector<1x32xf32>
    %53 = vector.broadcast %52 : vector<1x32xf32> to vector<16x32xf32>
    %54 = arith.addf %49, %53 : vector<16x32xf32>
    %cst_37 = arith.constant 0.000000e+00 : f32
    %55 = vector.broadcast %cst_37 : f32 to vector<16x32xf32>
    %56 = arith.maximumf %54, %55 : vector<16x32xf32>
    %c2_38 = arith.constant 2 : index
    %c0_39 = arith.constant 0 : index
    %c0_40 = arith.constant 0 : index
    %57 = vector.load %arg5[%c2_38, %c0_39, %c0_40] : memref<3x32x32xf32, #tpu.memory_space<vmem>>, vector<1x32x32xf32>
    %58 = vector.shape_cast %57 : vector<1x32x32xf32> to vector<32x32xf32>
    %cst_41 = arith.constant dense<0.000000e+00> : vector<16x32xf32>
    %59 = tpu.matmul %56, %58, %cst_41 {dimension_numbers = #tpu.dot_dimension_numbers<[1], [0], [0], [1], [0, 0, 1, 1], [], []>} : vector<16x32xf32>, vector<32x32xf32>, vector<16x32xf32> -> vector<16x32xf32>
    %c5 = arith.constant 5 : index
    %c0_42 = arith.constant 0 : index
    %60 = vector.load %arg6[%c5, %c0_42] : memref<6x32xf32, #tpu.memory_space<vmem>>, vector<1x32xf32>
    %61 = vector.shape_cast %60 : vector<1x32xf32> to vector<32xf32>
    %62 = vector.shape_cast %61 : vector<32xf32> to vector<1x32xf32>
    %63 = vector.broadcast %62 : vector<1x32xf32> to vector<16x32xf32>
    %64 = arith.addf %59, %63 : vector<16x32xf32>
    %cst_43 = arith.constant 0.000000e+00 : f32
    %65 = vector.broadcast %cst_43 : f32 to vector<16x32xf32>
    %66 = arith.maximumf %64, %65 : vector<16x32xf32>
    %c0_44 = arith.constant 0 : index
    %c0_45 = arith.constant 0 : index
    %c0_46 = arith.constant 0 : index
    %67 = vector.load %arg3[%c0_44, %c0_45, %c0_46] : memref<1x2x16xf32, #tpu.memory_space<vmem>>, vector<1x2x16xf32>
    %68 = vector.shape_cast %67 : vector<1x2x16xf32> to vector<2x16xf32>
    %cst_47 = arith.constant dense<0.000000e+00> : vector<2x32xf32>
    %69 = tpu.matmul %68, %66, %cst_47 {dimension_numbers = #tpu.dot_dimension_numbers<[1], [0], [0], [1], [0, 0, 1, 1], [], []>} : vector<2x16xf32>, vector<16x32xf32>, vector<2x32xf32> -> vector<2x32xf32>
    %c0_48 = arith.constant 0 : index
    %c0_49 = arith.constant 0 : index
    %70 = vector.load %arg7[%c0_48, %c0_49] : memref<32x32xf32, #tpu.memory_space<vmem>>, vector<32x32xf32>
    %cst_50 = arith.constant dense<0.000000e+00> : vector<2x32xf32>
    %71 = tpu.matmul %69, %70, %cst_50 {dimension_numbers = #tpu.dot_dimension_numbers<[1], [0], [0], [1], [0, 0, 1, 1], [], []>} : vector<2x32xf32>, vector<32x32xf32>, vector<2x32xf32> -> vector<2x32xf32>
    %c0_51 = arith.constant 0 : index
    %c0_52 = arith.constant 0 : index
    %72 = vector.load %arg8[%c0_51, %c0_52] : memref<1x32xf32, #tpu.memory_space<vmem>>, vector<1x32xf32>
    %73 = vector.broadcast %72 : vector<1x32xf32> to vector<2x32xf32>
    %74 = arith.addf %71, %73 : vector<2x32xf32>
    %cst_53 = arith.constant 0.000000e+00 : f32
    %75 = vector.broadcast %cst_53 : f32 to vector<2x32xf32>
    %76 = arith.maximumf %74, %75 : vector<2x32xf32>
    %c0_54 = arith.constant 0 : index
    %c0_55 = arith.constant 0 : index
    %77 = vector.load %arg9[%c0_54, %c0_55] : memref<32x2xf32, #tpu.memory_space<vmem>>, vector<32x2xf32>
    %cst_56 = arith.constant dense<0.000000e+00> : vector<2x2xf32>
    %78 = tpu.matmul %76, %77, %cst_56 {dimension_numbers = #tpu.dot_dimension_numbers<[1], [0], [0], [1], [0, 0, 1, 1], [], []>} : vector<2x32xf32>, vector<32x2xf32>, vector<2x2xf32> -> vector<2x2xf32>
    %c0_57 = arith.constant 0 : index
    %c0_58 = arith.constant 0 : index
    %79 = vector.load %arg10[%c0_57, %c0_58] : memref<1x2xf32, #tpu.memory_space<vmem>>, vector<1x2xf32>
    %80 = vector.broadcast %79 : vector<1x2xf32> to vector<2x2xf32>
    %81 = arith.addf %78, %80 : vector<2x2xf32>
    %c0_59 = arith.constant 0 : index
    %c0_60 = arith.constant 0 : index
    %c0_61 = arith.constant 0 : index
    %82 = vector.load %arg11[%c0_59, %c0_60, %c0_61] : memref<1x2x2xf32, #tpu.memory_space<vmem>>, vector<1x2x2xf32>
    %83 = vector.shape_cast %82 : vector<1x2x2xf32> to vector<2x2xf32>
    %84 = vector.shape_cast %81 : vector<2x2xf32> to vector<1x2x2xf32>
    tpu.vector_store %arg11[%c0_59, %c0_60, %c0_61], %84 {strides = array<i32>} : memref<1x2x2xf32, #tpu.memory_space<vmem>>, vector<1x2x2xf32>,
    return
  }
  func.func @transform_0(%arg0: i32) -> (i32, i32, i32) {
    %c0_i32 = arith.constant 0 : i32
    %c0_i32_0 = arith.constant 0 : i32
    %c0_i32_1 = arith.constant 0 : i32
    return %arg0, %c0_i32, %c0_i32_0 : i32, i32, i32
  }
  func.func @transform_1(%arg0: i32) -> (i32, i32, i32) {
    %c0_i32 = arith.constant 0 : i32
    %c0_i32_0 = arith.constant 0 : i32
    %c0_i32_1 = arith.constant 0 : i32
    return %arg0, %c0_i32, %c0_i32_0 : i32, i32, i32
  }
  func.func @transform_2(%arg0: i32) -> (i32, i32, i32) {
    %c0_i32 = arith.constant 0 : i32
    %c0_i32_0 = arith.constant 0 : i32
    %c0_i32_1 = arith.constant 0 : i32
    return %arg0, %c0_i32, %c0_i32_0 : i32, i32, i32
  }
  func.func @transform_3(%arg0: i32) -> (i32, i32, i32) {
    %c0_i32 = arith.constant 0 : i32
    %c0_i32_0 = arith.constant 0 : i32
    %c0_i32_1 = arith.constant 0 : i32
    %c0_i32_2 = arith.constant 0 : i32
    return %c0_i32, %c0_i32_0, %c0_i32_1 : i32, i32, i32
  }
  func.func @transform_4(%arg0: i32) -> (i32, i32, i32) {
    %c0_i32 = arith.constant 0 : i32
    %c0_i32_0 = arith.constant 0 : i32
    %c0_i32_1 = arith.constant 0 : i32
    %c0_i32_2 = arith.constant 0 : i32
    return %c0_i32, %c0_i32_0, %c0_i32_1 : i32, i32, i32
  }
  func.func @transform_5(%arg0: i32) -> (i32, i32) {
    %c0_i32 = arith.constant 0 : i32
    %c0_i32_0 = arith.constant 0 : i32
    %c0_i32_1 = arith.constant 0 : i32
    return %c0_i32, %c0_i32_0 : i32, i32
  }
  func.func @transform_6(%arg0: i32) -> (i32, i32) {
    %c0_i32 = arith.constant 0 : i32
    %c0_i32_0 = arith.constant 0 : i32
    %c0_i32_1 = arith.constant 0 : i32
    return %c0_i32, %c0_i32_0 : i32, i32
  }
  func.func @transform_7(%arg0: i32) -> (i32, i32) {
    %c0_i32 = arith.constant 0 : i32
    %c0_i32_0 = arith.constant 0 : i32
    %c0_i32_1 = arith.constant 0 : i32
    return %c0_i32, %c0_i32_0 : i32, i32
  }
  func.func @transform_8(%arg0: i32) -> (i32, i32) {
    %c0_i32 = arith.constant 0 : i32
    %c0_i32_0 = arith.constant 0 : i32
    %c0_i32_1 = arith.constant 0 : i32
    return %c0_i32, %c0_i32_0 : i32, i32
  }
  func.func @transform_9(%arg0: i32) -> (i32, i32) {
    %c0_i32 = arith.constant 0 : i32
    %c0_i32_0 = arith.constant 0 : i32
    %c0_i32_1 = arith.constant 0 : i32
    return %c0_i32, %c0_i32_0 : i32, i32
  }
  func.func @transform_10(%arg0: i32) -> (i32, i32, i32) {
    %c0_i32 = arith.constant 0 : i32
    %c0_i32_0 = arith.constant 0 : i32
    %c0_i32_1 = arith.constant 0 : i32
    return %arg0, %c0_i32, %c0_i32_0 : i32, i32, i32
  }
}

</mosaic_0001>

<bundles_post_ra>
// kernel: tpu_custom_call.1
= control target key start
LH: loop header
LB: loop body
LE: loop exit
PB: predicated region body
PF: predicated region fallthrough
CT: control target
= control target key end

     0   :  { %s2548_s0 = inlined_call_operand.hbm [shape: f32[4,16,32], index: 0, kind: input, shape index: {}]   ;;  %s2549_s1 = inlined_call_operand.hbm [shape: f32[4,16,16], index: 1, kind: input, shape index: {}]   ;;  %s2550_s2 = inlined_call_operand.vmem [shape: f32[4,2,16], index: 2, kind: input, shape index: {}]   ;;  %s2551_s3 = inlined_call_operand.hbm [shape: f32[3,32,32], index: 3, kind: input, shape index: {}]   ;;  %s2552_s4 = inlined_call_operand.hbm [shape: f32[3,32,32], index: 4, kind: input, shape index: {}]   ;;  %s2553_s5 = inlined_call_operand.vmem [shape: f32[6,32], index: 5, kind: input, shape index: {}]   ;;  %s2554_s6 = inlined_call_operand.vmem [shape: f32[32,32], index: 6, kind: input, shape index: {}]   ;;  %s2555_s7 = inlined_call_operand.vmem [shape: f32[1,32], index: 7, kind: input, shape index: {}]   ;;  %s2556_s8 = inlined_call_operand.vmem [shape: f32[32,2], index: 8, kind: input, shape index: {}]   ;;  %s2557_s9 = inlined_call_operand.vmem [shape: f32[1,2], index: 9, kind: input, shape index: {}]   ;;  %s2558_s10 = inlined_call_operand.vmem [shape: f32[4,2,2], index: 10, kind: output, shape index: {}]  }
   0x1   :  { %2569 = sst [smem:[#allocation16_spill]] %s2548_s0 }
   0x2   :  { %2570 = sst [smem:[#allocation17_spill]] %s2551_s3 }
   0x3   :  { %2571 = sst [smem:[#allocation18_spill]] %s2552_s4 }
   0x4   :  { %15 = vsyncpa [#allocation3], 0 }
   0x5   :  { %17 = vsyncpa [#allocation3 + $0x1], 0 }
   0x6   :  { %18 = vsyncpa [#allocation5], 0 }
   0x7   :  { %20 = vsyncpa [#allocation5 + $0x1], 0 }
   0x8   :  { %21 = vsyncpa [#allocation8], 0  ;;  %s2222_s13 = smov 0   ;;  %s2224_s14 = smov 0  }
   0x9   :  { %s2226_s15 = smov 0   ;;  %s2228_s16 = smov 0  }
   0xa LB: > { %2572 = sst [smem:[#allocation13_spill]] %s2152_s15  ;;  %s2241_s17 = sadd.s32 4294967295, %s2156_s16   ;;  %s2156_s16 = sphi %s2228_s16, %s2590_s16   ;;  %s2152_s15 = sphi %s2226_s15, %s2592_s15   ;;  %s2148_s14 = sphi %s2224_s14, %s2594_s14   ;;  %s2144_s13 = sphi %s2222_s13, %s2593_s13  }
   0xb   : > { %p47_p0 = scmp.ne.s32.totalorder %s2148_s14, %s2144_s13  ;;  %p2559_p1 = scmp.eq.s32.totalorder %s2241_s17, 0 }
   0xc   : > { %p1622_p2 = scmp.ge.s32.totalorder %s2156_s16, 1  ;;  %p283_p3 = scmp.lt.s32.totalorder %s2156_s16, 5 }
   0xd   : > { %p2249_p4 = por %p2559_p1, %p47_p0  ;;  %s2158_s20 = smov [#allocation6]  }
   0xe   : > { %p2253_p5 = pnand %p1622_p2, %p283_p3  ;;  %s295_s21 = sshll.u32 %s2158_s20, 4  ;;  %s296_s21 = int_to_ptr.vmem [resolvable:$true] %s295_s21 }
   0xf   : > { %s2573_s18 = scalar_select %p2249_p4, 1, 0 }
  0x10   : > { %s2574_s19 = scalar_select %p2253_p5, 1, 0 }
  0x11   : > { %p1936_p6 = pneg %p2253_p5  ;;  %s2159_s23 = smov [#allocation7]  }
  0x12   : > { %s308_s24 = sshll.u32 %s2159_s23, 4  ;;  %s2576_s3 = sld [smem:[#allocation17_spill]]  ;;  %s2265_s24 = int_to_ptr.vmem [resolvable:$true] %s308_s24 }
  0x13   : > { %p2261_p7 = pnand %p1936_p6, %p2559_p1 }
  0x15   : > { %p1996_p9 = pneg %p2261_p7 }
  0x18   : > { %s1994_s27 = scalar_lea.hbm %s2576_s3, 1536 }
  0x19   : > { %p1995_p8 = scmp.ne.s32.totalorder %s2576_s3, %s1994_s27  ;;  %p2001_p12 = scmp.lt.u32.totalorder %s1994_s27, %s2576_s3 }
  0x1b   : > { %p1997_p10 = pnand %p1996_p9, %p1995_p8 }
  0x1d   : > { %p1998_p11 = pneg %p1997_p10 }
  0x1f   : > { %p2003_p13 = pnand %p2001_p12, %p1998_p11 }
  0x21   : > { %2006 = shalt.err (!%p2003_p13)
}
  0x22   : > { %s2007_s12 = scalar_lea.vmem %s296_s21, 1536  ;;  %p2015_p6 = scmp.lt.s32.totalorder %s296_s21, %s296_s21 }
  0x23   : > { %p2008_p0 = scmp.ne.s32.totalorder %s296_s21, %s2007_s12  ;;  %p2016_p1 = scmp.lt.s32.totalorder %s2007_s12, %s2007_s12 }
  0x25   : > { %p2010_p2 = pnand %p2008_p0, %p1996_p9  ;;  %p2017_p4 = por %p2016_p1, %p2015_p6 }
  0x27   : > { %p2011_p3 = pneg %p2010_p2 }
  0x29   : > { %p2018_p5 = pnand %p2017_p4, %p2011_p3 }
  0x2b   : > { %2021 = shalt.err (!%p2018_p5)
}
  0x2c   : > { %s2562_s13 = smov 128   ;;  %s2564_s20 = smov 8  }
  0x2d   : > { %1939 = dma.hbm_to_vmem [thread:$0]  (!%p2261_p7), %s2576_s3, 1536, %s296_s21, [#allocation5], %s2562_s13, %s2562_s13, %s2564_s20  }
  0x2e   : > { %s2577_s4 = sld [smem:[#allocation18_spill]] }
  0x34   : > { %s2022_s28 = scalar_lea.hbm %s2577_s4, 1536 }
  0x35   : > { %p2023_p1 = scmp.ne.s32.totalorder %s2577_s4, %s2022_s28  ;;  %p2029_p8 = scmp.lt.u32.totalorder %s2022_s28, %s2577_s4 }
  0x37   : > { %p2025_p4 = pnand %p2023_p1, %p1996_p9 }
  0x39   : > { %p2026_p5 = pneg %p2025_p4 }
  0x3b   : > { %p2031_p10 = pnand %p2029_p8, %p2026_p5 }
  0x3d   : > { %2034 = shalt.err (!%p2031_p10)
}
  0x3e   : > { %s2035_s21 = scalar_lea.vmem %s2265_s24, 1536  ;;  %p2043_p0 = scmp.lt.s32.totalorder %s2265_s24, %s2265_s24 }
  0x3f   : > { %p2036_p11 = scmp.ne.s32.totalorder %s2265_s24, %s2035_s21  ;;  %p2044_p2 = scmp.lt.s32.totalorder %s2035_s21, %s2035_s21 }
  0x41   : > { %p2038_p12 = pnand %p2036_p11, %p1996_p9  ;;  %p2045_p3 = por %p2044_p2, %p2043_p0 }
  0x43   : > { %p2039_p13 = pneg %p2038_p12 }
  0x45   : > { %p2046_p6 = pnand %p2045_p3, %p2039_p13 }
  0x47   : > { %2049 = shalt.err (!%p2046_p6)
}
  0x48   : > { %1942 = dma.hbm_to_vmem [thread:$0]  (!%p2261_p7), %s2577_s4, 1536, %s2265_s24, [#allocation8], %s2562_s13, %s2562_s13, %s2564_s20  }
  0x49   : > { %s2321_s26 = sadd.s32 1, %s2156_s16   ;;  %s34_s22 = sadd.s32 1, %s2152_s15 }
  0x4a   : > { %2578 = sst [smem:[#allocation14_spill]] %s2321_s26  ;;  %s31_s27 = ssub.s32 %s2156_s16, %s2321_s26 }
  0x4b   : > { %p41_p9 = scmp.ne.s32.totalorder %s2152_s15, %s2148_s14  ;;  %p32_p1 = scmp.eq.s32.totalorder %s31_s27, 0 }
  0x4c   : > { %p42_p4 = scmp.eq.s32.totalorder %s2156_s16, 0  ;;  %p1952_p5 = scmp.lt.s32.totalorder %s2156_s16, 4 }
  0x4d   : > { %s337_s28 = sand.u32 1, %s2152_s15   ;;  %s1670_s11 = sshll.u32 %s2156_s16, 8 }
  0x4e   : > { %s2332_s29 = scalar_select %p32_p1, %s2152_s15, %s34_s22  }
  0x4f   : > { %p43_p8 = por %p42_p4, %p41_p9  ;;  %s2334_s30 = sshll.u32 %s337_s28, 4 }
  0x50   : > { %2579 = sst [smem:[#allocation15_spill]] %s2332_s29  ;;  %s2580_s0 = sld [smem:[#allocation16_spill]] }
  0x51   : > { %s341_s23 = scalar_lea.vmem [#allocation2], %s2334_s30  ;;  %p2343_p7 = pnand %p1952_p5, %p43_p8 }
  0x52   : > { %s348_s25 = sshll.u32 %s341_s23, 4  ;;  %s2352_s12 = scalar_lea.hbm %s2549_s1, %s1670_s11  ;;  %s2347_s25 = int_to_ptr.vmem [resolvable:$true] %s348_s25 }
  0x53   : > { %s2354_s21 = scalar_lea.sflag [#allocation3], %s337_s28  ;;  %p2052_p11 = pneg %p2343_p7 }
  0x56   : > { %s2340_s24 = scalar_lea.hbm %s2580_s0, %s1670_s11  ;;  %s2055_s4 = scalar_lea.hbm %s2580_s0, 1024 }
  0x57   : > { %s2050_s20 = scalar_lea.hbm %s2340_s24, 256  ;;  %p2056_p0 = scmp.lt.u32.totalorder %s2340_s24, %s2580_s0 }
  0x58   : > { %p2051_p10 = scmp.ne.s32.totalorder %s2340_s24, %s2050_s20  ;;  %p2057_p2 = scmp.lt.u32.totalorder %s2055_s4, %s2050_s20 }
  0x59   : > { %p2059_p6 = scmp.lt.u32.totalorder %s2050_s20, %s2340_s24 }
  0x5a   : > { %p2053_p12 = pnand %p2052_p11, %p2051_p10  ;;  %p2058_p3 = por %p2057_p2, %p2056_p0 }
  0x5c   : > { %p2054_p13 = pneg %p2053_p12  ;;  %p2060_p9 = por %p2059_p6, %p2058_p3 }
  0x5e   : > { %p2061_p1 = pnand %p2060_p9, %p2054_p13 }
  0x60   : > { %2064 = shalt.err (!%p2061_p1)
}
  0x61   : > { %s2065_s13 = scalar_lea.vmem %s2347_s25, 256  ;;  %s2162_s3 = smov [#allocation2]  }
  0x62   : > { %p2066_p4 = scmp.ne.s32.totalorder %s2347_s25, %s2065_s13  ;;  %s2070_s28 = sshll.u32 %s2162_s3, 4  ;;  %s2071_s28 = int_to_ptr.vmem [resolvable:$false] %s2070_s28 }
  0x63   : > { %s2072_s15 = scalar_lea.vmem %s2071_s28, 512  ;;  %p2073_p10 = scmp.lt.s32.totalorder %s2347_s25, %s2071_s28 }
  0x64   : > { %p2068_p5 = pnand %p2066_p4, %p2052_p11  ;;  %p2074_p12 = scmp.lt.s32.totalorder %s2072_s15, %s2065_s13 }
  0x66   : > { %p2069_p8 = pneg %p2068_p5  ;;  %p2075_p0 = por %p2074_p12, %p2073_p10 }
  0x68   : > { %p2076_p2 = pnand %p2075_p0, %p2069_p8 }
  0x6a   : > { %2079 = shalt.err (!%p2076_p2)
}
  0x6b   : > { %s2582_s4 = smov 8   ;;  %s2583_s20 = smov 128  }
  0x6c   : > { %1946 = dma.hbm_to_vmem [thread:$0]  (!%p2343_p7), %s2340_s24, 256, %s2347_s25, %s2354_s21, %s2583_s20, %s2583_s20, %s2582_s4  }
  0x6d   : > { %s362_s29 = scalar_lea.vmem [#allocation4], %s2334_s30  ;;  %s358_s22 = sand.u32 1, %s2156_s16  }
  0x6e   : > { %s369_s11 = sshll.u32 %s362_s29, 4  ;;  %s2389_s23 = scalar_lea.sflag [#allocation5], %s358_s22  ;;  %s2387_s11 = int_to_ptr.vmem [resolvable:$true] %s369_s11 }
  0x6f   : > { %s2080_s13 = scalar_lea.hbm %s2352_s12, 256  ;;  %s2085_s15 = scalar_lea.hbm %s2549_s1, 1024 }
  0x70   : > { %p2081_p13 = scmp.ne.s32.totalorder %s2352_s12, %s2080_s13  ;;  %p2086_p9 = scmp.lt.u32.totalorder %s2352_s12, %s2549_s1 }
  0x71   : > { %p2087_p1 = scmp.lt.u32.totalorder %s2085_s15, %s2080_s13  ;;  %p2089_p5 = scmp.lt.u32.totalorder %s2080_s13, %s2352_s12 }
  0x72   : > { %p2083_p3 = pnand %p2081_p13, %p2052_p11 }
  0x73   : > { %p2088_p4 = por %p2087_p1, %p2086_p9 }
  0x74   : > { %p2084_p6 = pneg %p2083_p3 }
  0x75   : > { %p2090_p8 = por %p2089_p5, %p2088_p4 }
  0x77   : > { %p2091_p10 = pnand %p2090_p8, %p2084_p6 }
  0x79   : > { %2094 = shalt.err (!%p2091_p10)
}
  0x7a   : > { %s2095_s16 = scalar_lea.vmem %s2387_s11, 256  ;;  %s2163_s30 = smov [#allocation4]  }
  0x7b   : > { %p2096_p12 = scmp.ne.s32.totalorder %s2387_s11, %s2095_s16  ;;  %s2100_s24 = sshll.u32 %s2163_s30, 4  ;;  %s2101_s24 = int_to_ptr.vmem [resolvable:$false] %s2100_s24 }
  0x7c   : > { %s2102_s0 = scalar_lea.vmem %s2101_s24, 512  ;;  %p2103_p13 = scmp.lt.s32.totalorder %s2387_s11, %s2101_s24 }
  0x7d   : > { %p2098_p0 = pnand %p2096_p12, %p2052_p11  ;;  %p2104_p3 = scmp.lt.s32.totalorder %s2102_s0, %s2095_s16 }
  0x7f   : > { %p2099_p2 = pneg %p2098_p0  ;;  %p2105_p9 = por %p2104_p3, %p2103_p13 }
  0x81   : > { %p2106_p1 = pnand %p2105_p9, %p2099_p2 }
  0x83   : > { %2109 = shalt.err (!%p2106_p1)
}
  0x84   : > { %1949 = dma.hbm_to_vmem [thread:$0]  (!%p2343_p7), %s2352_s12, 256, %s2387_s11, %s2389_s23, %s2583_s20, %s2583_s20, %s2582_s4  }
  0x85   : > { %p2584_p11 = scmp.ne.s32.totalorder %s2574_s19, 0 }
  0x86   : > { %s390_s26 = sand.u32 (!%p2584_p11), 1, %s2148_s14   ;;  %p2585_p6 = scmp.ne.s32.totalorder (!%p2584_p11), %s2573_s18, 0 }
  0x87   : > { %388 = sbr.rel (%p2584_p11) target bundleno = 2767 (0xacf), region = 60  ;;  %s1633_s25 = sshll.u32 (!%p2584_p11), %s390_s26, 4 }
  0x88   : > { %s391_s21 = scalar_lea.sflag (!%p2584_p11), [#allocation3], %s390_s26  ;;  %s394_s29 = scalar_lea.vmem (!%p2584_p11), [#allocation2], %s1633_s25 }
  0x8e   : > { %2127 = dma.done.wait (%p2585_p6), %s391_s21, 256  }
  0x8f   : > { %2129 = vsyncadd (%p2585_p6), %s391_s21, 4294967040  ;;  %s399_s27 = sand.u32 1, %s2241_s17   ;;  %s403_s13 = scalar_lea.vmem [#allocation4], %s1633_s25 }
  0x90   : > { %s400_s22 = scalar_lea.sflag [#allocation5], %s399_s27 }
  0x91   : > { %2131 = dma.done.wait (%p2585_p6), %s400_s22, 256  }
  0x92   : > { %2133 = vsyncadd (%p2585_p6), %s400_s22, 4294967040  ;;  %p2586_p7 = scmp.eq.s32.totalorder %s2241_s17, 0 }
  0x94   : > { %2135 = dma.done.wait (%p2586_p7), [#allocation5], 1536   ;;  %p2587_p4 = pmov %p2586_p7 }
  0x96   : > { %2137 = vsyncadd (%p2587_p4), [#allocation5], 4294965760  ;;  %p2588_p5 = pmov %p2587_p4 }
  0x97   : > { %p2589_p8 = pmov %p2587_p4 }
  0x98   : > { %2139 = dma.done.wait (%p2588_p5), [#allocation8], 1536  }
  0x99   : > { %2141 = vsyncadd (%p2589_p8), [#allocation8], 4294965760  ;;  %vm468_vm0 = vcmask 130048   ;;  %v464_v0 = vld [vmem:[%s394_s29] sm:$0xff]  ;;  %v465_v1 = vld [vmem:[%s394_s29 + $0x8] sm:$0xff]  ;;  %vm559_vm1 = vcmask 261120  }
  0x9a   : > { %v2438_v2 = vld [vmem:[%s403_s13] sm:$0xff]  ;;  %v1849_v3 = vpack.c.bf16 %v465_v1, %v464_v0  ;;  %v551_v5 = vld [vmem:[#allocation6 + $0x8] sm:$0xff]  ;;  %v553_v8 = vld [vmem:[#allocation6 + $0x18] sm:$0xff]  ;;  %vm2165_vm2 = vmmov 0   ;;  %p456_p10 = scmp.lt.s32.totalorder %s2241_s17, 3  ;;  %vm1500_vm3 = vcmask 9216  }
  0x9b   : > { %1737 = vmatprep.mubr.msk.f32.mxu0 %vm468_vm0, %v2438_v2  ;;  %v550_v4 = vld [vmem:[#allocation6] sm:$0xff]  ;;  %v552_v7 = vld [vmem:[#allocation6 + $0x10] sm:$0xff]  ;;  %v2442_v10 = vld [vmem:[%s403_s13 + $0x8] sm:$0xff] }
  0x9c   : > { %v1853_v6 = vpack.c.bf16 %v551_v5, %v550_v4  ;;  %1850 = vmatprep.subr.bf16.mxu0 %v1849_v3  ;;  %v1857_v9 = vpack.c.bf16 %v553_v8, %v552_v7  ;;  %v643_v11 = vld [vmem:[#allocation7] sm:$0xff]  ;;  %v644_v12 = vld [vmem:[#allocation7 + $0x8] sm:$0xff]  ;;  %v645_v16 = vld [vmem:[#allocation7 + $0x10] sm:$0xff]  ;;  %s2596_s17 = smov (!%p456_p10, %s2241_s17), 3 }
  0x9d   : > { %1852 = vmatpush3.bf16.msra.mxu0 %v1849_v3  ;;  %v1861_v13 = vpack.c.bf16 %v644_v12, %v643_v11  ;;  %v646_v17 = vld [vmem:[#allocation7 + $0x18] sm:$0xff]  ;;  %v1641_v19 = vld [vmem:[%s2553_s5] ss:$0 sm:$0xff]  ;;  %v812_v27 = vld [vmem:[#allocation6 + $0x28] sm:$0xff]  ;;  %s1637_s13 = sshll.u32 %s2596_s17, 1 }
  0x9e   : > { %1854 = vmatprep.subr.bf16.mxu1 %v1853_v6  ;;  %v1865_v18 = vpack.c.bf16 %v646_v17, %v645_v16  ;;  %v811_v26 = vld [vmem:[#allocation6 + $0x20] sm:$0xff]  ;;  %v813_v28 = vld [vmem:[#allocation6 + $0x30] sm:$0xff]  ;;  %v814_v30 = vld [vmem:[#allocation6 + $0x38] sm:$0xff]  ;;  %s459_s12 = scalar_lea.vmem %s2550_s2, %s1637_s13  ;;  %s463_s29 = scalar_lea.vmem %s2558_s10, %s1637_s13 }
  0x9f   : > { %1856 = vmatpush3.bf16.msra.mxu1 %v1853_v6  ;;  %1862 = vmatprep.subr.bf16.mxu0 %v1861_v13  ;;  %v1873_v29 = vpack.c.bf16 %v812_v27, %v811_v26  ;;  %v1877_v31 = vpack.c.bf16 %v814_v30, %v813_v28  ;;  %v1644_v32 = vld [vmem:[%s2553_s5 + $0x1] ss:$0 sm:$0xff]  ;;  %v905_v41 = vld [vmem:[#allocation7 + $0x28] sm:$0xff]  ;;  %v906_v45 = vld [vmem:[#allocation7 + $0x30] sm:$0xff] }
  0xa0   : > { %1858 = vmatprep.subr.bf16.mxu1 %v1857_v9  ;;  %1738 = vmatmul.mubr.msk.f32.vlgmr.msra.gmra.mrb[0].mxu0 %vm468_vm0, %v2442_v10  ;;  %v904_v40 = vld [vmem:[#allocation7 + $0x20] sm:$0xff]  ;;  %v907_v46 = vld [vmem:[#allocation7 + $0x38] sm:$0xff]  ;;  %v1073_v56 = vld [vmem:[#allocation6 + $0x48] sm:$0xff] }
  0xa1   : > { %1864 = vmatpush3.bf16.msra.mxu0 %v1861_v13  ;;  %v1881_v42 = vpack.c.bf16 %v905_v41, %v904_v40  ;;  %v1885_v47 = vpack.c.bf16 %v907_v46, %v906_v45  ;;  %v1649_v48 = vld [vmem:[%s2553_s5 + $0x2] ss:$0 sm:$0xff]  ;;  %v1074_v57 = vld [vmem:[#allocation6 + $0x50] sm:$0xff]  ;;  %v1075_v59 = vld [vmem:[#allocation6 + $0x58] sm:$0xff] }
  0xa2   : > { %1866 = vmatprep.subr.bf16.mxu0 %v1865_v18  ;;  %v1072_v55 = vld [vmem:[#allocation6 + $0x40] sm:$0xff]  ;;  %v1897_v60 = vpack.c.bf16 %v1075_v59, %v1074_v57  ;;  %v1166_v6 = vld [vmem:[#allocation7 + $0x48] sm:$0xff]  ;;  %v1167_v11 = vld [vmem:[#allocation7 + $0x50] sm:$0xff] }
  0xa3   : > { %1860 = vmatpush3.bf16.msra.mxu1 %v1857_v9  ;;  %v1893_v58 = vpack.c.bf16 %v1073_v56, %v1072_v55  ;;  %v1652_v61 = vld [vmem:[%s2553_s5 + $0x3] ss:$0 sm:$0xff]  ;;  %v1168_v12 = vld [vmem:[#allocation7 + $0x58] sm:$0xff]  ;;  %v1660_v28 = vld [vmem:[%s2553_s5 + $0x5] ss:$0 sm:$0xff] }
  0xa4   : > { %v1165_v5 = vld [vmem:[#allocation7 + $0x40] sm:$0xff]  ;;  %v1905_v13 = vpack.c.bf16 %v1168_v12, %v1167_v11  ;;  %v1334_v26 = vld [vmem:[%s2554_s6 + $0x18] sm:$0xff] }
  0xa5   : > { %1868 = vmatpush3.bf16.msra.mxu0 %v1865_v18  ;;  %v1901_v7 = vpack.c.bf16 %v1166_v6, %v1165_v5  ;;  %v1664_v45 = vld [vmem:[%s2555_s7] ss:$0 sm:$0xff] }
  0xa6   : > { %1874 = vmatprep.subr.bf16.mxu0 %v1873_v29 }
 0x173   : > { %v1739_v14 = vpop.f32.mrb[0].mxu0 }
 0x174   : > { %v541_v15 = vpop.f32.mrb[1].mxu0 }
 0x175   : > { %1748 = vmatprep.mubr.msk.f32.mxu1 %vm559_vm1, %v541_v15 }
 0x176   : > { %1749 = vmatmul.mubr.msk.f32.vlgmr.msra.gmra.mrb[0].mxu1 %vm559_vm1, %v1739_v14 }
 0x177   : > { %1766 = vmatprep.mubr.msk.f32.mxu1 %vm468_vm0, %v2438_v2 }
 0x249   : > { %v1750_v20 = vpop.f32.mrb[0].mxu1 }
 0x24a   : > { %v638_v21 = vadd.f32 %v1750_v20, %v1641_v19  ;;  %v632_v22 = vpop.f32.mrb[1].mxu1  ;;  %v2164_v20 = vmov 0.0|0.0  }
 0x24b   : > { %v633_v23 = vadd.f32 %v1641_v19, %v632_v22  ;;  %v1331_v22 = vld [vmem:[%s2554_s6] sm:$0xff] }
 0x24c   : > { %v642_v25 = vmax.f32 %v638_v21, 0.0  ;;  %v2166_v21 = vmov 0.0  }
 0x24d   : > { %v641_v24 = vmax.f32 %v633_v23, 0.0  ;;  %v1332_v23 = vld [vmem:[%s2554_s6 + $0x8] sm:$0xff] }
 0x24f   : > { %1759 = vmatprep.mubr.msk.f32.mxu0 %vm559_vm1, %v641_v24  ;;  %v1333_v24 = vld [vmem:[%s2554_s6 + $0x10] sm:$0xff] }
 0x250   : > { %1760 = vmatmul.mubr.msk.f32.vlgmr.msra.gmra.mrb[2].mxu0 %vm559_vm1, %v642_v25  ;;  %v1913_v25 = vpack.c.bf16 %v1332_v23, %v1331_v22  ;;  %v1916_v27 = vpack.c.bf16 %v1334_v26, %v1333_v24 }
 0x251   : > { %1876 = vmatpush3.bf16.msra.mxu0 %v1873_v29 }
 0x252   : > { %1878 = vmatprep.subr.bf16.mxu0 %v1877_v31 }
 0x255   : > { %1880 = vmatpush3.bf16.msra.mxu0 %v1877_v31 }
 0x323   : > { %v1761_v33 = vpop.f32.mrb[2].mxu0 }
 0x324   : > { %v730_v34 = vadd.f32 %v1761_v33, %v1644_v32  ;;  %v724_v35 = vpop.f32.mrb[3].mxu0 }
 0x325   : > { %v725_v36 = vadd.f32 %v1644_v32, %v724_v35 }
 0x326   : > { %v734_v37 = vmax.f32 %v730_v34, 0.0 }
 0x327   : > { %v733_v38 = vmax.f32 %v725_v36, 0.0  ;;  %v1257_v36 = vld [vmem:[%s459_s12] sm:$0x3] }
 0x329   : > { %v1869_v39 = vpack.c.bf16 %v734_v37, %v733_v38  ;;  %v1416_v37 = vld [vmem:[%s2556_s8] sm:$0xff]  ;;  %v1417_v38 = vld [vmem:[%s2556_s8 + $0x8] sm:$0xff] }
 0x32b   : > { %1870 = vmatprep.subr.bf16.mxu1 %v1869_v39 }
 0x32c   : > { %1872 = vmatpush3.bf16.msra.mxu1 %v1869_v39  ;;  %v1919_v39 = vpack.c.bf16 %v1417_v38, %v1416_v37 }
 0x32d   : > { %1882 = vmatprep.subr.bf16.mxu1 %v1881_v42 }
 0x32f   : > { %1767 = vmatmul.mubr.msk.f32.vlgmr.msra.gmra.mrb[2].mxu1 %vm468_vm0, %v2442_v10 }
 0x330   : > { %1884 = vmatpush3.bf16.msra.mxu1 %v1881_v42  ;;  %v1418_v42 = vld [vmem:[%s2556_s8 + $0x10] sm:$0xff] }
 0x331   : > { %1886 = vmatprep.subr.bf16.mxu1 %v1885_v47 }
 0x334   : > { %1888 = vmatpush3.bf16.msra.mxu1 %v1885_v47 }
 0x335   : > { %1894 = vmatprep.subr.bf16.mxu1 %v1893_v58 }
 0x402   : > { %v1768_v43 = vpop.f32.mrb[2].mxu1 }
 0x403   : > { %v801_v44 = vpop.f32.mrb[3].mxu1 }
 0x404   : > { %1777 = vmatprep.mubr.msk.f32.mxu0 %vm559_vm1, %v801_v44 }
 0x405   : > { %1778 = vmatmul.mubr.msk.f32.vlgmr.msra.gmra.mrb[4].mxu0 %vm559_vm1, %v1768_v43  ;;  %v1419_v43 = vld [vmem:[%s2556_s8 + $0x18] sm:$0xff] }
 0x406   : > { %1795 = vmatprep.mubr.msk.f32.mxu0 %vm468_vm0, %v2438_v2  ;;  %v1922_v44 = vpack.c.bf16 %v1419_v43, %v1418_v42 }
 0x4d8   : > { %v1779_v49 = vpop.f32.mrb[4].mxu0 }
 0x4d9   : > { %v898_v50 = vadd.f32 %v1779_v49, %v1649_v48  ;;  %v892_v51 = vpop.f32.mrb[5].mxu0 }
 0x4da   : > { %v893_v52 = vadd.f32 %v1649_v48, %v892_v51 }
 0x4db   : > { %v902_v54 = vmax.f32 %v898_v50, 0.0  ;;  %v1666_v50 = vld [vmem:[%s2557_s9] ss:$0 sm:$0xff] }
 0x4dc   : > { %v901_v53 = vmax.f32 %v893_v52, 0.0 }
 0x4de   : > { %1788 = vmatprep.mubr.msk.f32.mxu1 %vm559_vm1, %v901_v53 }
 0x4df   : > { %1789 = vmatmul.mubr.msk.f32.vlgmr.msra.gmra.mrb[4].mxu1 %vm559_vm1, %v902_v54 }
 0x4e0   : > { %1896 = vmatpush3.bf16.msra.mxu1 %v1893_v58 }
 0x4e1   : > { %1898 = vmatprep.subr.bf16.mxu1 %v1897_v60 }
 0x4e4   : > { %1900 = vmatpush3.bf16.msra.mxu1 %v1897_v60 }
 0x4e5   : > { %1909 = vmatprep.subr.bf16.mxu1 %v2164_v20 }
 0x5b2   : > { %v1790_v62 = vpop.f32.mrb[4].mxu1 }
 0x5b3   : > { %v991_v63 = vadd.f32 %v1790_v62, %v1652_v61  ;;  %v985_v0 = vpop.f32.mrb[5].mxu1 }
 0x5b4   : > { %v986_v1 = vadd.f32 %v1652_v61, %v985_v0 }
 0x5b5   : > { %v995_v2 = vmax.f32 %v991_v63, 0.0 }
 0x5b6   : > { %v994_v3 = vmax.f32 %v986_v1, 0.0 }
 0x5b8   : > { %v1889_v4 = vpack.c.bf16 %v995_v2, %v994_v3 }
 0x5ba   : > { %1890 = vmatprep.subr.bf16.mxu0 %v1889_v4 }
 0x5bb   : > { %1892 = vmatpush3.bf16.msra.mxu0 %v1889_v4 }
 0x5bc   : > { %1902 = vmatprep.subr.bf16.mxu0 %v1901_v7 }
 0x5be   : > { %1796 = vmatmul.mubr.msk.f32.vlgmr.msra.gmra.mrb[6].mxu0 %vm468_vm0, %v2442_v10  ;;  %v1657_v10 = vld [vmem:[%s2553_s5 + $0x4] ss:$0 sm:$0xff] }
 0x5bf   : > { %1904 = vmatpush3.bf16.msra.mxu0 %v1901_v7 }
 0x5c0   : > { %1906 = vmatprep.subr.bf16.mxu0 %v1905_v13 }
 0x5c3   : > { %1908 = vmatpush3.bf16.msra.mxu0 %v1905_v13 }
 0x5c4   : > { %1912 = vmatprep.subr.bf16.mxu0 %v2164_v20 }
 0x691   : > { %v1797_v8 = vpop.f32.mrb[6].mxu0 }
 0x692   : > { %v1062_v9 = vpop.f32.mrb[7].mxu0 }
 0x693   : > { %1806 = vmatprep.mubr.msk.f32.mxu1 %vm559_vm1, %v1062_v9 }
 0x694   : > { %1807 = vmatmul.mubr.msk.f32.vlgmr.msra.gmra.mrb[6].mxu1 %vm559_vm1, %v1797_v8 }
 0x695   : > { %1824 = vmatprep.mubr.msk.f32.mxu1 %vm2165_vm2, %v2166_v21 }
 0x767   : > { %v1808_v14 = vpop.f32.mrb[6].mxu1 }
 0x768   : > { %v1159_v15 = vadd.f32 %v1808_v14, %v1657_v10  ;;  %v1153_v16 = vpop.f32.mrb[7].mxu1 }
 0x769   : > { %v1154_v17 = vadd.f32 %v1657_v10, %v1153_v16 }
 0x76a   : > { %v1163_v19 = vmax.f32 %v1159_v15, 0.0 }
 0x76b   : > { %v1162_v18 = vmax.f32 %v1154_v17, 0.0 }
 0x76d   : > { %1817 = vmatprep.mubr.msk.f32.mxu0 %vm559_vm1, %v1162_v18 }
 0x76e   : > { %1818 = vmatmul.mubr.msk.f32.vlgmr.msra.gmra.mrb[8].mxu0 %vm559_vm1, %v1163_v19 }
 0x76f   : > { %1835 = vmatprep.mubr.msk.f32.mxu0 %vm2165_vm2, %v2166_v21  ;;  %1914 = vmatpush3.bf16.msra.mxu0 %v1913_v25 }
 0x770   : > { %1915 = vmatprep.subr.bf16.mxu0 %v2164_v20 }
 0x773   : > { %1917 = vmatpush3.bf16.msra.mxu0 %v1916_v27 }
 0x841   : > { %v1819_v29 = vpop.f32.mrb[8].mxu0 }
 0x842   : > { %v1252_v30 = vadd.f32 %v1819_v29, %v1660_v28  ;;  %v1246_v31 = vpop.f32.mrb[9].mxu0 }
 0x843   : > { %v1247_v32 = vadd.f32 %v1660_v28, %v1246_v31 }
 0x844   : > { %v1256_v33 = vmax.f32 %v1252_v30, 0.0 }
 0x845   : > { %v1255_v34 = vmax.f32 %v1247_v32, 0.0 }
 0x847   : > { %v1910_v35 = vpack.c.bf16 %v1256_v33, %v1255_v34 }
 0x849   : > { %1911 = vmatpush3.bf16.msra.mxu1 %v1910_v35 }
 0x84a   : > { %1918 = vmatprep.subr.bf16.mxu1 %v2164_v20 }
 0x84c   : > { %1825 = vmatmul.mubr.msk.f32.vlgmr.msra.gmra.mrb[8].mxu1 %vm468_vm0, %v1257_v36 }
 0x84d   : > { %1846 = vmatprep.mubr.msk.f32.mxu1 %vm2165_vm2, %v2166_v21  ;;  %1920 = vmatpush3.bf16.msra.mxu1 %v1919_v39 }
 0x84e   : > { %1921 = vmatprep.subr.bf16.mxu1 %v2164_v20 }
 0x851   : > { %1923 = vmatpush3.bf16.msra.mxu1 %v1922_v44 }
 0x91f   : > { %v1327_v40 = vpop.f32.mrb[8].mxu1 }
 0x920   : > { %v1826_v41 = vpop.f32.mrb[9].mxu1  ;;  %1836 = vmatmul.mubr.msk.f32.vlgmr.msra.gmra.mrb[10].mxu0 %vm559_vm1, %v1327_v40 }
 0x9f3   : > { %v1411_v46 = vpop.f32.mrb[10].mxu0 }
 0x9f4   : > { %v1412_v47 = vadd.f32 %v1664_v45, %v1411_v46  ;;  %v1837_v48 = vpop.f32.mrb[11].mxu0 }
 0x9f6   : > { %v1415_v49 = vmax.f32 %v1412_v47, 0.0 }
 0x9f8   : > { %1847 = vmatmul.mubr.msk.f32.vlgmr.msra.gmra.mrb[10].mxu1 %vm559_vm1, %v1415_v49 }
 0xacb   : > { %v1496_v51 = vpop.f32.mrb[10].mxu1 }
 0xacc   : > { %v1497_v52 = vadd.f32 %v1666_v50, %v1496_v51  ;;  %v1848_v53 = vpop.f32.mrb[11].mxu1 }
 0xace   : > { %1501 = vst.msk [vmem:[%s463_s29] sm:$0x3] %vm1500_vm3, %v1497_v52 }
 0xacf PF: > { %s2590_s16 = sld [smem:[#allocation14_spill]]  ;;  %s2591_s27 = sld [smem:[#allocation13_spill]] }
 0xad0   : > { %s2592_s15 = sld [smem:[#allocation15_spill]]  ;;  %s2593_s13 = smov %s2148_s14 }
 0xad5   : > { %p24_p12 = scmp.ge.s32.totalorder %s2590_s16, 6   ;;  %s2594_s14 = smov %s2591_s27 }
 0xad7   :  { %26 = sbr.rel (!%p24_p12) target bundleno = 10 (0xa), region = 128 }
 0xade   :  { %1521 = vsyncpa [#allocation3], 1 }
 0xadf   :  { %1523 = vsyncpa [#allocation3 + $0x1], 1 }
 0xae0   :  { %1524 = vsyncpa [#allocation5], 1 }
 0xae1   :  { %1526 = vsyncpa [#allocation5 + $0x1], 1 }
 0xae2   :  { %1527 = vsyncpa [#allocation8], 1 }

</bundles_post_ra>
